<compile_context>
chip_gen: v7x
topology: tpu7x:2x2x1
jax: 0.10.0
libtpu: 0.0.40
codegen_flags: <defaults>
</compile_context>

<pallas_src>
import functools
import math

import jax
import jax.numpy as jnp
from jax.experimental import pallas as pl
from jax.experimental.pallas import tpu as pltpu

LANE = 128


def _round_up(x, m):
    return ((x + m - 1) // m) * m


# ---------------------------------------------------------------------------
# Prologue:  y = x @ W_lin^T (y_dtype) ;  z = x @ W_self^T + b_total (f32)
# Weights are concatenated -> one matmul at full MXU lane width.
# ---------------------------------------------------------------------------
def _prologue_kernel(x_ref, w_ref, b_ref, y_ref, z_ref, *, f_out_pad):
    yz = jnp.dot(x_ref[...], w_ref[...], preferred_element_type=jnp.float32)
    y_ref[...] = yz[:, :f_out_pad].astype(y_ref.dtype)
    z_ref[...] = yz[:, f_out_pad:] + b_ref[...]


# ---------------------------------------------------------------------------
# Main:  out[i,:] = sum_k A[i,k] @ y[k,:]  + z[i,:]
# Accumulates directly into the f32 output block (resident across the k axis).
# ---------------------------------------------------------------------------
def _aggregate_kernel(adj_ref, y_ref, z_ref, o_ref, *, tk, y_resident):
    k = pl.program_id(1)

    @pl.when(k == 0)
    def _():
        o_ref[...] = z_ref[...]          # fold self-loop + bias term in at init

    # int8 {0,1} -> float is exact.  Two-step cast stays on the well-supported
    # i8->f32 (sitofp) and f32->bf16 (truncf) lowering paths; result feeds the
    # MXU natively (bf16 x bf16 -> f32 accumulate).
    adj = adj_ref[...].astype(jnp.float32).astype(y_ref.dtype)

    if y_resident:
        start = pl.multiple_of(k * tk, tk)
        y_tile = y_ref[pl.ds(start, tk), :]
    else:
        y_tile = y_ref[...]

    o_ref[...] += jnp.dot(adj, y_tile, preferred_element_type=jnp.float32)


def graph_conv_layer(adj, x, w_lin, b_lin, w_self, b_self, bias,
                     *, tm=512, tk=2048, y_dtype=jnp.bfloat16,
                     max_resident_y_bytes=20 * 2**20):
    """GraphConvLayer forward (aggregation='sum') on a dense adjacency.

    adj:  (N, N)  A[dst, src] with values in {0, 1}; int8/bool/bf16/f32 accepted
          (int8 avoids any host-side conversion traffic).
    x:    (N, F_in)
    w_*:  (F_out, F_in)  torch nn.Linear layout
    b_*:  (F_out,)
    Returns (N, F_out) float32.
    """
    n, f_in = x.shape
    f_out = w_lin.shape[0]

    # -------- tile selection --------
    n128 = _round_up(n, LANE)
    tm = min(tm, n128)
    tk = min(tk, n128)
    # v7x has 2 TensorCores sharding the 'parallel' dst axis: keep >= 2 dst tiles.
    if n128 // tm < 2 and n128 >= 2 * LANE:
        tm = max(LANE, (tm // 2) // LANE * LANE)
    n_pad = _round_up(n, math.lcm(tm, tk))
    f_in_pad = _round_up(f_in, LANE)
    f_out_pad = _round_up(f_out, LANE)

    y_itemsize = jnp.dtype(y_dtype).itemsize
    # y is kept fully VMEM-resident (DMA'd once) when its (double-buffered)
    # footprint is small; otherwise it is streamed per reduction tile.
    y_resident = 2 * n_pad * f_out_pad * y_itemsize <= max_resident_y_bytes

    # -------- host-side layout glue (skipped when inputs are already compact) --------
    if adj.dtype != jnp.int8:
        adj = adj.astype(jnp.int8)                       # {0,1} values: exact
    if adj.shape != (n_pad, n_pad):
        adj = jnp.zeros((n_pad, n_pad), jnp.int8).at[:n, :n].set(adj)

    if x.shape != (n_pad, f_in_pad) or x.dtype != jnp.float32:
        x = jnp.zeros((n_pad, f_in_pad), jnp.float32).at[:n, :f_in].set(
            x.astype(jnp.float32))

    w_cat = jnp.zeros((f_in_pad, 2 * f_out_pad), jnp.float32)
    w_cat = w_cat.at[:f_in, :f_out].set(jnp.transpose(w_lin).astype(jnp.float32))
    w_cat = w_cat.at[:f_in, f_out_pad:f_out_pad + f_out].set(
        jnp.transpose(w_self).astype(jnp.float32))
    b_total = (b_lin + b_self + bias).astype(jnp.float32)
    b_p = jnp.zeros((1, f_out_pad), jnp.float32).at[0, :f_out].set(b_total)

    # -------- prologue kernel --------
    y, z = pl.pallas_call(
        functools.partial(_prologue_kernel, f_out_pad=f_out_pad),
        out_shape=(jax.ShapeDtypeStruct((n_pad, f_out_pad), y_dtype),
                   jax.ShapeDtypeStruct((n_pad, f_out_pad), jnp.float32)),
        grid=(n_pad // tm,),
        in_specs=[
            pl.BlockSpec((tm, f_in_pad), lambda i: (i, 0)),
            pl.BlockSpec((f_in_pad, 2 * f_out_pad), lambda i: (0, 0)),
            pl.BlockSpec((1, f_out_pad), lambda i: (0, 0)),
        ],
        out_specs=(pl.BlockSpec((tm, f_out_pad), lambda i: (i, 0)),
                   pl.BlockSpec((tm, f_out_pad), lambda i: (i, 0))),
        compiler_params=pltpu.CompilerParams(
            dimension_semantics=("parallel",)),
    )(x, w_cat, b_p)

    # -------- main kernel --------
    if y_resident:
        y_spec = pl.BlockSpec((n_pad, f_out_pad), lambda i, k: (0, 0))
    else:
        y_spec = pl.BlockSpec((tk, f_out_pad), lambda i, k: (k, 0))

    vmem_need = (2 * tm * tk                                          # adj (int8)
                 + 2 * (n_pad if y_resident else tk) * f_out_pad * y_itemsize
                 + 2 * tm * f_out_pad * 4                             # z
                 + 2 * tm * f_out_pad * 4)                            # out
    vmem_limit = int(min(max(vmem_need + (8 << 20), 16 << 20), 48 << 20))

    y_reads = 1 if y_resident else (n_pad // tm)
    cost = pl.CostEstimate(
        flops=2 * n_pad * n_pad * f_out_pad,
        transcendentals=0,
        bytes_accessed=(n_pad * n_pad
                        + y_reads * n_pad * f_out_pad * y_itemsize
                        + 2 * n_pad * f_out_pad * 4))

    out_p = pl.pallas_call(
        functools.partial(_aggregate_kernel, tk=tk, y_resident=y_resident),
        out_shape=jax.ShapeDtypeStruct((n_pad, f_out_pad), jnp.float32),
        grid=(n_pad // tm, n_pad // tk),
        in_specs=[
            pl.BlockSpec((tm, tk), lambda i, k: (i, k)),            # adjacency (int8)
            y_spec,                                                  # y (bf16/f32)
            pl.BlockSpec((tm, f_out_pad), lambda i, k: (i, 0)),     # z (f32)
        ],
        out_specs=pl.BlockSpec((tm, f_out_pad), lambda i, k: (i, 0)),
        compiler_params=pltpu.CompilerParams(
            dimension_semantics=("parallel", "arbitrary"),
            vmem_limit_bytes=vmem_limit),
        cost_estimate=cost,
    )(adj, y, z)

    return out_p[:n, :f_out]


if __name__ == "__main__":
    key = jax.random.PRNGKey(0)
    N, F_IN, F_OUT = 512, 96, 32

    k_adj, k_x, k_w1, k_b1, k_w2, k_b2 = jax.random.split(key, 6)

    # Adjacency produced upstream in the compact int8 dtype (values {0,1}).
    adj_i8 = (jax.random.uniform(k_adj, (N, N)) < 0.3).astype(jnp.int8)
    adj_f32 = adj_i8.astype(jnp.float32)
    x = jax.random.normal(k_x, (N, F_IN), dtype=jnp.float32)

    # Deterministic parameter init (mimicking torch.nn.Linear uniform bounds).
    bound = 1.0 / (F_IN ** 0.5)
    w_lin = jax.random.uniform(k_w1, (F_OUT, F_IN), minval=-bound, maxval=bound)
    b_lin = jax.random.uniform(k_b1, (F_OUT,), minval=-bound, maxval=bound)
    w_self = jax.random.uniform(k_w2, (F_OUT, F_IN), minval=-bound, maxval=bound)
    b_self = jax.random.uniform(k_b2, (F_OUT,), minval=-bound, maxval=bound)
    bias = jnp.zeros((F_OUT,), dtype=jnp.float32)   # self.bias = zeros(out_features)

    # Pure-JAX reference (module semantics, f32).
    ref = adj_f32 @ x @ w_lin.T + b_lin + x @ w_self.T + b_self + bias

    # 1) Fast path: int8 adjacency stream, bf16 y, VMEM-resident y.
    #    Small tiles so the src-reduction (k) loop is actually exercised.
    out = graph_conv_layer(adj_i8, x, w_lin, b_lin, w_self, b_self, bias,
                           tm=128, tk=256)
    jax.block_until_ready(out)
    assert out.shape == ref.shape
    rel_err = float(jnp.linalg.norm(out - ref) / (jnp.linalg.norm(ref) + 1e-12))
    assert rel_err < 1e-2, f"bf16-y fast path mismatch: rel err {rel_err}"

    # 2) f32-y fallback path (streamed y) -> tight elementwise check of the
    #    kernel structure against the reference.
    out32 = graph_conv_layer(adj_f32, x, w_lin, b_lin, w_self, b_self, bias,
                             tm=128, tk=256, y_dtype=jnp.float32,
                             max_resident_y_bytes=0)
    jax.block_until_ready(out32)
    assert jnp.allclose(out32, ref, atol=1e-3, rtol=1e-3), "f32 path mismatch"

    print("KERNEL_OK")
</pallas_src>

<mosaic_0001>
module attributes {stable_mosaic.version = 11 : i64} {
  func.func @_prologue_kernel(%arg0: i32, %arg1: memref<128x128xf32, #tpu.memory_space<vmem>>, %arg2: memref<128x256xf32, #tpu.memory_space<vmem>>, %arg3: memref<1x128xf32, #tpu.memory_space<vmem>>, %arg4: memref<128x128xbf16, #tpu.memory_space<vmem>>, %arg5: memref<128x128xf32, #tpu.memory_space<vmem>>) attributes {dimension_semantics = [#tpu.dimension_semantics<parallel>], iteration_bounds = array<i64: 4>, scalar_prefetch = 0 : i64, scratch_operands = 0 : i64, tpu.core_type = #tpu.core_type<tc>, window_params = [{transform_indices = @transform_0, window_bounds = array<i64: 128, 128>}, {pipeline_mode = #tpu.pipeline_mode<synchronous>, transform_indices = @transform_1, window_bounds = array<i64: 128, 256>}, {pipeline_mode = #tpu.pipeline_mode<synchronous>, transform_indices = @transform_2, window_bounds = array<i64: 1, 128>}, {transform_indices = @transform_3, window_bounds = array<i64: 128, 128>}, {transform_indices = @transform_4, window_bounds = array<i64: 128, 128>}]} {
    %c0 = arith.constant 0 : index
    %c0_0 = arith.constant 0 : index
    %0 = vector.load %arg1[%c0, %c0_0] : memref<128x128xf32, #tpu.memory_space<vmem>>, vector<128x128xf32>
    %c0_1 = arith.constant 0 : index
    %c0_2 = arith.constant 0 : index
    %1 = vector.load %arg2[%c0_1, %c0_2] : memref<128x256xf32, #tpu.memory_space<vmem>>, vector<128x256xf32>
    %cst = arith.constant dense<0.000000e+00> : vector<128x256xf32>
    %2 = tpu.matmul %0, %1, %cst {dimension_numbers = #tpu.dot_dimension_numbers<[1], [0], [0], [1], [0, 0, 1, 1], [], []>} : vector<128x128xf32>, vector<128x256xf32>, vector<128x256xf32> -> vector<128x256xf32>
    %3 = vector.extract_strided_slice %2 {offsets = [0, 0], sizes = [128, 128], strides = [1, 1]} : vector<128x256xf32> to vector<128x128xf32>
    %4 = arith.truncf %3 : vector<128x128xf32> to vector<128x128xbf16>
    %c0_3 = arith.constant 0 : index
    %c0_4 = arith.constant 0 : index
    %5 = vector.load %arg4[%c0_3, %c0_4] : memref<128x128xbf16, #tpu.memory_space<vmem>>, vector<128x128xbf16>
    tpu.vector_store %arg4[%c0_3, %c0_4], %4 {strides = array<i32>} : memref<128x128xbf16, #tpu.memory_space<vmem>>, vector<128x128xbf16>,
    %6 = vector.extract_strided_slice %2 {offsets = [0, 128], sizes = [128, 128], strides = [1, 1]} : vector<128x256xf32> to vector<128x128xf32>
    %c0_5 = arith.constant 0 : index
    %c0_6 = arith.constant 0 : index
    %7 = vector.load %arg3[%c0_5, %c0_6] : memref<1x128xf32, #tpu.memory_space<vmem>>, vector<1x128xf32>
    %8 = vector.broadcast %7 : vector<1x128xf32> to vector<128x128xf32>
    %9 = arith.addf %6, %8 : vector<128x128xf32>
    %c0_7 = arith.constant 0 : index
    %c0_8 = arith.constant 0 : index
    %10 = vector.load %arg5[%c0_7, %c0_8] : memref<128x128xf32, #tpu.memory_space<vmem>>, vector<128x128xf32>
    tpu.vector_store %arg5[%c0_7, %c0_8], %9 {strides = array<i32>} : memref<128x128xf32, #tpu.memory_space<vmem>>, vector<128x128xf32>,
    return
  }
  func.func @transform_0(%arg0: i32) -> (i32, i32) {
    %c0_i32 = arith.constant 0 : i32
    %c0_i32_0 = arith.constant 0 : i32
    return %arg0, %c0_i32 : i32, i32
  }
  func.func @transform_1(%arg0: i32) -> (i32, i32) {
    %c0_i32 = arith.constant 0 : i32
    %c0_i32_0 = arith.constant 0 : i32
    %c0_i32_1 = arith.constant 0 : i32
    return %c0_i32, %c0_i32_0 : i32, i32
  }
  func.func @transform_2(%arg0: i32) -> (i32, i32) {
    %c0_i32 = arith.constant 0 : i32
    %c0_i32_0 = arith.constant 0 : i32
    %c0_i32_1 = arith.constant 0 : i32
    return %c0_i32, %c0_i32_0 : i32, i32
  }
  func.func @transform_3(%arg0: i32) -> (i32, i32) {
    %c0_i32 = arith.constant 0 : i32
    %c0_i32_0 = arith.constant 0 : i32
    return %arg0, %c0_i32 : i32, i32
  }
  func.func @transform_4(%arg0: i32) -> (i32, i32) {
    %c0_i32 = arith.constant 0 : i32
    %c0_i32_0 = arith.constant 0 : i32
    return %arg0, %c0_i32 : i32, i32
  }
}

</mosaic_0001>

<bundles_post_ra>
// kernel: tpu_custom_call.1
= control target key start
LH: loop header
LB: loop body
LE: loop exit
PB: predicated region body
PF: predicated region fallthrough
CT: control target
= control target key end

     0   :  { %10 = vsyncpa [#allocation3], 0  ;;  %s1459_s0 = inlined_call_operand.hbm [shape: f32[512,128], index: 0, kind: input, shape index: {}]   ;;  %s1460_s1 = inlined_call_operand.hbm [shape: f32[128,256], index: 1, kind: input, shape index: {}]   ;;  %s1461_s2 = inlined_call_operand.vmem [shape: f32[1,128], index: 2, kind: input, shape index: {}]   ;;  %s1462_s3 = inlined_call_operand.hbm [shape: bf16[512,128], index: 3, kind: output, shape index: {0}]   ;;  %s1463_s4 = inlined_call_operand.hbm [shape: f32[512,128], index: 4, kind: output, shape index: {1}]  }
   0x1   :  { %12 = vsyncpa [#allocation3 + $0x1], 0 }
   0x2   :  { %13 = vsyncpa [#allocation6], 0 }
   0x3   :  { %14 = vsyncpa [#allocation4], 0 }
   0x4   :  { %16 = vsyncpa [#allocation4 + $0x1], 0 }
   0x5   :  { %17 = vsyncpa [#allocation9], 0 }
   0x6   :  { %19 = vsyncpa [#allocation9 + $0x1], 0  ;;  %s1145_s15 = smov 0   ;;  %s1147_s16 = smov 0  }
   0x7   :  { %s1149_s17 = smov 0   ;;  %s1151_s18 = smov 0  }
   0x8 LB: > { %s1166_s19 = sadd.s32 4294967295, %s1105_s18   ;;  %s723_s20 = sadd.s32 4294967294, %s1105_s18   ;;  %s1105_s18 = sphi %s1151_s18, %s1482_s18   ;;  %s1101_s17 = sphi %s1149_s17, %s1481_s17   ;;  %s1097_s16 = sphi %s1147_s16, %s1480_s16   ;;  %s1093_s15 = sphi %s1145_s15, %s1479_s15  }
   0x9   : > { %p45_p0 = scmp.ne.s32.totalorder %s1097_s16, %s1093_s15  ;;  %p1464_p1 = scmp.eq.s32.totalorder %s1166_s19, 0 }
   0xa   : > { %p117_p3 = scmp.eq.s32.totalorder %s723_s20, 3  ;;  %p724_p5 = scmp.ge.s32.totalorder %s1105_s18, 1 }
   0xb   : > { %p1175_p4 = por %p1464_p1, %p45_p0  ;;  %p150_p7 = scmp.lt.s32.totalorder %s1105_s18, 5 }
   0xc   : > { %p1180_p6 = por %p117_p3, %p45_p0  ;;  %s1107_s24 = smov [#allocation5]  }
   0xd   : > { %s1467_s21 = scalar_select %p1175_p4, 1, 0 }
   0xe   : > { %s1468_s22 = scalar_select %p1180_p6, 1, 0 }
   0xf   : > { %p1185_p8 = pnand %p724_p5, %p150_p7  ;;  %s162_s25 = sshll.u32 %s1107_s24, 4  ;;  %s163_s25 = int_to_ptr.vmem [resolvable:$true] %s162_s25 }
  0x10   : > { %s1198_s27 = sadd.s32 1, %s1105_s18   ;;  %s32_s28 = sadd.s32 1, %s1101_s17 }
  0x11   : > { %s1469_s23 = scalar_select %p1185_p8, 1, 0 }
  0x12   : > { %p884_p9 = pneg %p1185_p8  ;;  %s29_s29 = ssub.s32 %s1105_s18, %s1198_s27 }
  0x13   : > { %s945_s6 = scalar_lea.hbm %s1460_s1, 4096 }
  0x14   : > { %p1193_p10 = pnand %p884_p9, %p1464_p1  ;;  %p946_p11 = scmp.ne.s32.totalorder %s1460_s1, %s945_s6 }
  0x15   : > { %p952_p3 = scmp.lt.u32.totalorder %s945_s6, %s1460_s1 }
  0x16   : > { %p947_p12 = pneg %p1193_p10 }
  0x18   : > { %p948_p13 = pnand %p947_p12, %p946_p11 }
  0x1a   : > { %p949_p0 = pneg %p948_p13 }
  0x1c   : > { %p954_p5 = pnand %p952_p3, %p949_p0 }
  0x1e   : > { %957 = shalt.err (!%p954_p5)
}
  0x1f   : > { %s958_s11 = scalar_lea.vmem %s163_s25, 4096  ;;  %p966_p2 = scmp.lt.s32.totalorder %s163_s25, %s163_s25 }
  0x20   : > { %p959_p7 = scmp.ne.s32.totalorder %s163_s25, %s958_s11  ;;  %p967_p6 = scmp.lt.s32.totalorder %s958_s11, %s958_s11 }
  0x22   : > { %p961_p9 = pnand %p959_p7, %p947_p12  ;;  %p968_p4 = por %p967_p6, %p966_p2 }
  0x24   : > { %p962_p1 = pneg %p961_p9 }
  0x26   : > { %p969_p8 = pnand %p968_p4, %p962_p1 }
  0x28   : > { %972 = shalt.err (!%p969_p8)
}
  0x29   : > { %s1108_s12 = smov 256   ;;  %s1109_s13 = smov 16  }
  0x2a   : > { %887 = dma.hbm_to_vmem [thread:$0]  (!%p1193_p10), %s1460_s1, 4096, %s163_s25, [#allocation6], %s1108_s12, %s1108_s12, %s1109_s13  }
  0x2b   : > { %p30_p11 = scmp.eq.s32.totalorder %s29_s29, 0  ;;  %p39_p2 = scmp.ne.s32.totalorder %s1101_s17, %s1097_s16 }
  0x2c   : > { %p40_p1 = scmp.eq.s32.totalorder %s1105_s18, 0  ;;  %p900_p4 = scmp.lt.s32.totalorder %s1105_s18, 4 }
  0x2d   : > { %s1224_s24 = scalar_select %p30_p11, %s1101_s17, %s32_s28  }
  0x2e   : > { %p41_p6 = por %p40_p1, %p39_p2  ;;  %p1471_p8 = scmp.eq.s32.totalorder %s1166_s19, 3 }
  0x2f   : > { %s179_s5 = sand.u32 1, %s1101_s17   ;;  %s760_s6 = sshll.u32 %s1105_s18, 11 }
  0x30   : > { %p1228_p12 = por %p1471_p8, %p39_p2  ;;  %s727_s7 = sshll.u32 %s179_s5, 7 }
  0x31   : > { %s1237_s9 = scalar_lea.hbm %s1459_s0, %s760_s6  ;;  %s183_s25 = scalar_lea.vmem [#allocation2], %s727_s7 }
  0x32   : > { %s190_s28 = sshll.u32 %s183_s25, 4  ;;  %p1239_p10 = pnand %p900_p4, %p41_p6  ;;  %s1243_s28 = int_to_ptr.vmem [resolvable:$true] %s190_s28 }
  0x33   : > { %s1245_s10 = scalar_lea.sflag [#allocation3], %s179_s5  ;;  %s973_s11 = scalar_lea.hbm %s1237_s9, 2048 }
  0x34   : > { %p974_p13 = scmp.ne.s32.totalorder %s1237_s9, %s973_s11  ;;  %p975_p0 = pneg %p1239_p10 }
  0x35   : > { %s978_s14 = scalar_lea.hbm %s1459_s0, 8192  ;;  %p979_p7 = scmp.lt.u32.totalorder %s1237_s9, %s1459_s0 }
  0x36   : > { %p976_p3 = pnand %p975_p0, %p974_p13  ;;  %p980_p9 = scmp.lt.u32.totalorder %s978_s14, %s973_s11 }
  0x37   : > { %p982_p2 = scmp.lt.u32.totalorder %s973_s11, %s1237_s9 }
  0x38   : > { %p977_p5 = pneg %p976_p3  ;;  %p981_p11 = por %p980_p9, %p979_p7 }
  0x3a   : > { %p983_p1 = por %p982_p2, %p981_p11 }
  0x3c   : > { %p984_p4 = pnand %p983_p1, %p977_p5 }
  0x3e   : > { %987 = shalt.err (!%p984_p4)
}
  0x3f   : > { %s988_s5 = scalar_lea.vmem %s1243_s28, 2048  ;;  %s1110_s7 = smov [#allocation2]  }
  0x40   : > { %p989_p6 = scmp.ne.s32.totalorder %s1243_s28, %s988_s5  ;;  %s993_s26 = sshll.u32 %s1110_s7, 4  ;;  %s994_s26 = int_to_ptr.vmem [resolvable:$false] %s993_s26 }
  0x41   : > { %s995_s8 = scalar_lea.vmem %s994_s26, 4096  ;;  %p996_p3 = scmp.lt.s32.totalorder %s1243_s28, %s994_s26 }
  0x42   : > { %p991_p8 = pnand %p989_p6, %p975_p0  ;;  %p997_p7 = scmp.lt.s32.totalorder %s995_s8, %s988_s5 }
  0x44   : > { %p992_p13 = pneg %p991_p8  ;;  %p998_p9 = por %p997_p7, %p996_p3 }
  0x46   : > { %p999_p11 = pnand %p998_p9, %p992_p13 }
  0x48   : > { %1002 = shalt.err (!%p999_p11)
}
  0x49   : > { %s1111_s25 = smov 128   ;;  %s1112_s11 = smov 8  }
  0x4a   : > { %891 = dma.hbm_to_vmem [thread:$0]  (!%p1239_p10), %s1237_s9, 2048, %s1243_s28, %s1245_s10, %s1111_s25, %s1111_s25, %s1112_s11  }
  0x4b   : > { %p1474_p0 = scmp.ne.s32.totalorder %s1469_s23, 0 }
  0x4c   : > { %s1276_s12 = sand.u32 (!%p1474_p0), 1, %s1097_s16   ;;  %p1475_p5 = scmp.ne.s32.totalorder (!%p1474_p0), %s1467_s21, 0 }
  0x4d   : > { %202 = sbr.rel (%p1474_p0) target bundleno = 405 (0x195), region = 32  ;;  %s731_s13 = sshll.u32 (!%p1474_p0), %s1276_s12, 7 }
  0x4e   : > { %s205_s14 = scalar_lea.sflag (!%p1474_p0), [#allocation3], %s1276_s12  ;;  %s1282_s20 = scalar_lea.vmem (!%p1474_p0), [#allocation2], %s731_s13 }
  0x54   : > { %1076 = dma.done.wait (%p1475_p5), %s205_s14, 2048  }
  0x55   : > { %1078 = vsyncadd (%p1475_p5), %s205_s14, 4294965248  ;;  %p1476_p10 = scmp.eq.s32.totalorder %s1166_s19, 0 }
  0x57   : > { %1080 = dma.done.wait (%p1476_p10), [#allocation6], 4096   ;;  %p1477_p2 = pmov %p1476_p10 }
  0x58   : > { %v1113_v0 = vmov 0.0   ;;  %v262_v1 = vld [vmem:[#allocation5 + $0x8] sm:$0xff]  ;;  %v264_v2 = vld [vmem:[#allocation5 + $0x18] sm:$0xff]  ;;  %v261_v3 = vld [vmem:[#allocation5] sm:$0xff]  ;;  %s733_s9 = sshll.u32 %s1276_s12, 6  ;;  %s1334_s28 = scalar_lea.vmem [#allocation8], %s731_s13 }
  0x59   : > { %1082 = vsyncadd (%p1477_p2), [#allocation6], 4294963200  ;;  %357 = vmatprep.mubr.f32.mxu0 %v1113_v0  ;;  %405 = vmatprep.mubr.f32.mxu1 %v1113_v0  ;;  %v826_v4 = vpack.c.bf16 %v264_v2, %v262_v1  ;;  %v263_v5 = vld [vmem:[#allocation5 + $0x10] sm:$0xff]  ;;  %v266_v6 = vld [vmem:[#allocation5 + $0x28] sm:$0xff]  ;;  %s1340_s29 = scalar_lea.vmem [#allocation7], %s733_s9  ;;  %s777_s6 = sshll.u32 %s1166_s19, 10 }
  0x5a   : > { %v268_v7 = vld [vmem:[#allocation5 + $0x38] sm:$0xff]  ;;  %v828_v8 = vpack.c.bf16 %v263_v5, %v261_v3  ;;  %v265_v10 = vld [vmem:[#allocation5 + $0x20] sm:$0xff]  ;;  %v267_v11 = vld [vmem:[#allocation5 + $0x30] sm:$0xff]  ;;  %s592_s10 = sshll.u32 %s1340_s29, 4  ;;  %s778_s5 = sshll.u32 %s1166_s19, 11  ;;  %s1368_s10 = int_to_ptr.vmem [resolvable:$true] %s592_s10 }
  0x5b   : > { %v830_v9 = vpack.c.bf16 %v268_v7, %v266_v6  ;;  %v270_v12 = vld [vmem:[#allocation5 + $0x48] sm:$0xff]  ;;  %827 = vmatprep.subr.bf16.mxu0 %v826_v4  ;;  %858 = vmatprep.subr.bf16.mxu1 %v826_v4  ;;  %v272_v13 = vld [vmem:[#allocation5 + $0x58] sm:$0xff]  ;;  %v832_v14 = vpack.c.bf16 %v267_v11, %v265_v10  ;;  %v269_v16 = vld [vmem:[#allocation5 + $0x40] sm:$0xff]  ;;  %s1376_s8 = scalar_lea.hbm %s1462_s3, %s777_s6  ;;  %s608_s25 = sshll.u32 %s1334_s28, 4  ;;  %s1388_s25 = int_to_ptr.vmem [resolvable:$true] %s608_s25 }
  0x5c   : > { %829 = vmatpush1.bf16.msra.mxu0 %v828_v8  ;;  %866 = vmatpush1.bf16.msra.mxu1 %v828_v8  ;;  %v834_v15 = vpack.c.bf16 %v272_v13, %v270_v12  ;;  %v271_v17 = vld [vmem:[#allocation5 + $0x50] sm:$0xff]  ;;  %v274_v18 = vld [vmem:[#allocation5 + $0x68] sm:$0xff]  ;;  %v276_v19 = vld [vmem:[#allocation5 + $0x78] sm:$0xff]  ;;  %s1384_s13 = scalar_lea.hbm %s1463_s4, %s778_s5  ;;  %s574_s14 = scalar_lea.sflag [#allocation4], %s1276_s12 }
  0x5d   : > { %831 = vmatprep.subr.bf16.mxu0 %v830_v9  ;;  %859 = vmatprep.subr.bf16.mxu1 %v830_v9  ;;  %v836_v20 = vpack.c.bf16 %v271_v17, %v269_v16  ;;  %v838_v21 = vpack.c.bf16 %v276_v19, %v274_v18  ;;  %v273_v22 = vld [vmem:[#allocation5 + $0x60] sm:$0xff]  ;;  %v275_v23 = vld [vmem:[#allocation5 + $0x70] sm:$0xff]  ;;  %v278_v24 = vld [vmem:[#allocation5 + $0x88] sm:$0xff]  ;;  %s1114_s21 = smov [#allocation7]  }
  0x5e   : > { %v280_v25 = vld [vmem:[#allocation5 + $0x98] sm:$0xff]  ;;  %v840_v26 = vpack.c.bf16 %v275_v23, %v273_v22  ;;  %v277_v28 = vld [vmem:[#allocation5 + $0x80] sm:$0xff]  ;;  %v279_v29 = vld [vmem:[#allocation5 + $0x90] sm:$0xff]  ;;  %s1007_s23 = sshll.u32 %s1114_s21, 4  ;;  %s1008_s23 = int_to_ptr.vmem [resolvable:$false] %s1007_s23 }
  0x5f   : > { %v842_v27 = vpack.c.bf16 %v280_v25, %v278_v24  ;;  %v282_v30 = vld [vmem:[#allocation5 + $0xa8] sm:$0xff]  ;;  %v284_v31 = vld [vmem:[#allocation5 + $0xb8] sm:$0xff]  ;;  %v844_v32 = vpack.c.bf16 %v279_v29, %v277_v28  ;;  %v281_v34 = vld [vmem:[#allocation5 + $0xa0] sm:$0xff]  ;;  %s1009_s9 = scalar_lea.vmem %s1008_s23, 2048  ;;  %p1010_p8 = scmp.lt.s32.totalorder %s1368_s10, %s1008_s23 }
  0x60   : > { %833 = vmatpush1.bf16.msra.mxu0 %v832_v14  ;;  %867 = vmatpush1.bf16.msra.mxu1 %v832_v14  ;;  %v846_v33 = vpack.c.bf16 %v284_v31, %v282_v30  ;;  %v283_v35 = vld [vmem:[#allocation5 + $0xb0] sm:$0xff]  ;;  %v286_v36 = vld [vmem:[#allocation5 + $0xc8] sm:$0xff]  ;;  %v288_v37 = vld [vmem:[#allocation5 + $0xd8] sm:$0xff] }
  0x61   : > { %835 = vmatprep.subr.bf16.mxu0 %v834_v15  ;;  %860 = vmatprep.subr.bf16.mxu1 %v834_v15  ;;  %v848_v38 = vpack.c.bf16 %v283_v35, %v281_v34  ;;  %v850_v39 = vpack.c.bf16 %v288_v37, %v286_v36  ;;  %v285_v40 = vld [vmem:[#allocation5 + $0xc0] sm:$0xff]  ;;  %v287_v41 = vld [vmem:[#allocation5 + $0xd0] sm:$0xff]  ;;  %v290_v42 = vld [vmem:[#allocation5 + $0xe8] sm:$0xff] }
  0x62   : > { %v292_v43 = vld [vmem:[#allocation5 + $0xf8] sm:$0xff]  ;;  %v852_v44 = vpack.c.bf16 %v287_v41, %v285_v40  ;;  %v289_v46 = vld [vmem:[#allocation5 + $0xe0] sm:$0xff]  ;;  %v291_v47 = vld [vmem:[#allocation5 + $0xf0] sm:$0xff] }
  0x63   : > { %v854_v45 = vpack.c.bf16 %v292_v43, %v290_v42  ;;  %v856_v48 = vpack.c.bf16 %v291_v47, %v289_v46  ;;  %v245_v49 = vld [vmem:[%s1282_s20] sm:$0xff]  ;;  %v246_v51 = vld [vmem:[%s1282_s20 + $0x8] sm:$0xff]  ;;  %v247_v53 = vld [vmem:[%s1282_s20 + $0x10] sm:$0xff] }
  0x64   : > { %837 = vmatpush1.bf16.msra.mxu0 %v836_v20  ;;  %868 = vmatpush1.bf16.msra.mxu1 %v836_v20  ;;  %v253_v50 = vld [vmem:[%s1282_s20 + $0x40] sm:$0xff]  ;;  %v254_v52 = vld [vmem:[%s1282_s20 + $0x48] sm:$0xff]  ;;  %v255_v54 = vld [vmem:[%s1282_s20 + $0x50] sm:$0xff] }
  0x65   : > { %839 = vmatprep.subr.bf16.mxu0 %v838_v21  ;;  %861 = vmatprep.subr.bf16.mxu1 %v838_v21  ;;  %v248_v55 = vld [vmem:[%s1282_s20 + $0x18] sm:$0xff]  ;;  %v249_v57 = vld [vmem:[%s1282_s20 + $0x20] sm:$0xff]  ;;  %v250_v59 = vld [vmem:[%s1282_s20 + $0x28] sm:$0xff] }
  0x66   : > { %v256_v56 = vld [vmem:[%s1282_s20 + $0x58] sm:$0xff]  ;;  %v257_v58 = vld [vmem:[%s1282_s20 + $0x60] sm:$0xff]  ;;  %v258_v60 = vld [vmem:[%s1282_s20 + $0x68] sm:$0xff] }
  0x67   : > { %v251_v61 = vld [vmem:[%s1282_s20 + $0x30] sm:$0xff]  ;;  %v252_v63 = vld [vmem:[%s1282_s20 + $0x38] sm:$0xff]  ;;  %v1327_v2 = vld [vmem:[%s1461_s2] ss:$0 sm:$0xff] }
  0x68   : > { %841 = vmatpush1.bf16.msra.mxu0 %v840_v26  ;;  %869 = vmatpush1.bf16.msra.mxu1 %v840_v26  ;;  %v259_v62 = vld [vmem:[%s1282_s20 + $0x70] sm:$0xff]  ;;  %v260_v1 = vld [vmem:[%s1282_s20 + $0x78] sm:$0xff]  ;;  %s1003_s20 = scalar_lea.vmem %s1368_s10, 1024 }
  0x69   : > { %843 = vmatprep.subr.bf16.mxu0 %v842_v27  ;;  %862 = vmatprep.subr.bf16.mxu1 %v842_v27  ;;  %p1004_p1 = scmp.ne.s32.totalorder %s1368_s10, %s1003_s20  ;;  %p1011_p13 = scmp.lt.s32.totalorder %s1009_s9, %s1003_s20 }
  0x6b   : > { %p1005_p4 = pnand %p1004_p1, %p1228_p12  ;;  %p1012_p3 = por %p1011_p13, %p1010_p8 }
  0x6c   : > { %845 = vmatpush1.bf16.msra.mxu0 %v844_v32  ;;  %870 = vmatpush1.bf16.msra.mxu1 %v844_v32 }
  0x6d   : > { %847 = vmatprep.subr.bf16.mxu0 %v846_v33  ;;  %863 = vmatprep.subr.bf16.mxu1 %v846_v33  ;;  %p1006_p6 = pneg %p1005_p4 }
  0x6f   : > { %p1013_p7 = pnand %p1012_p3, %p1006_p6 }
  0x70   : > { %849 = vmatpush1.bf16.msra.mxu0 %v848_v38  ;;  %871 = vmatpush1.bf16.msra.mxu1 %v848_v38 }
  0x71   : > { %851 = vmatprep.subr.bf16.mxu0 %v850_v39  ;;  %864 = vmatprep.subr.bf16.mxu1 %v850_v39 }
  0x74   : > { %853 = vmatpush1.bf16.msra.mxu0 %v852_v44  ;;  %872 = vmatpush1.bf16.msra.mxu1 %v852_v44 }
  0x75   : > { %855 = vmatprep.subr.bf16.mxu0 %v854_v45  ;;  %865 = vmatprep.subr.bf16.mxu1 %v854_v45 }
  0x78   : > { %857 = vmatpush1.bf16.msra.mxu0 %v856_v48  ;;  %873 = vmatpush1.bf16.msra.mxu1 %v856_v48 }
  0x7b   : > { %358 = vmatmul.mubr.f32.vlgmr.msra.gmra.mrb[0].mxu0 %v245_v49  ;;  %406 = vmatmul.mubr.f32.vlgmr.msra.gmra.mrb[0].mxu1 %v253_v50 }
  0x7c   : > { %363 = vmatprep.mubr.f32.mxu0 %v1113_v0  ;;  %411 = vmatprep.mubr.f32.mxu1 %v1113_v0 }
  0x7f   : > { %364 = vmatmul.mubr.f32.gmra.mrb[2].mxu0 %v246_v51  ;;  %412 = vmatmul.mubr.f32.gmra.mrb[2].mxu1 %v254_v52 }
  0x80   : > { %369 = vmatprep.mubr.f32.mxu0 %v1113_v0  ;;  %417 = vmatprep.mubr.f32.mxu1 %v1113_v0 }
  0x83   : > { %370 = vmatmul.mubr.f32.gmra.mrb[4].mxu0 %v247_v53  ;;  %418 = vmatmul.mubr.f32.gmra.mrb[4].mxu1 %v255_v54 }
  0x84   : > { %375 = vmatprep.mubr.f32.mxu0 %v1113_v0  ;;  %423 = vmatprep.mubr.f32.mxu1 %v1113_v0 }
  0x87   : > { %376 = vmatmul.mubr.f32.gmra.mrb[6].mxu0 %v248_v55  ;;  %424 = vmatmul.mubr.f32.gmra.mrb[6].mxu1 %v256_v56 }
  0x88   : > { %381 = vmatprep.mubr.f32.mxu0 %v1113_v0  ;;  %429 = vmatprep.mubr.f32.mxu1 %v1113_v0 }
  0x8b   : > { %382 = vmatmul.mubr.f32.gmra.mrb[8].mxu0 %v249_v57  ;;  %430 = vmatmul.mubr.f32.gmra.mrb[8].mxu1 %v257_v58 }
  0x8c   : > { %387 = vmatprep.mubr.f32.mxu0 %v1113_v0  ;;  %435 = vmatprep.mubr.f32.mxu1 %v1113_v0 }
  0x8f   : > { %388 = vmatmul.mubr.f32.gmra.mrb[10].mxu0 %v250_v59  ;;  %436 = vmatmul.mubr.f32.gmra.mrb[10].mxu1 %v258_v60 }
  0x90   : > { %393 = vmatprep.mubr.f32.mxu0 %v1113_v0  ;;  %441 = vmatprep.mubr.f32.mxu1 %v1113_v0 }
  0x93   : > { %394 = vmatmul.mubr.f32.gmra.mrb[12].mxu0 %v251_v61  ;;  %442 = vmatmul.mubr.f32.gmra.mrb[12].mxu1 %v259_v62 }
  0x94   : > { %399 = vmatprep.mubr.f32.mxu0 %v1113_v0  ;;  %447 = vmatprep.mubr.f32.mxu1 %v1113_v0 }
  0x97   : > { %400 = vmatmul.mubr.f32.gmra.mrb[14].mxu0 %v252_v63  ;;  %448 = vmatmul.mubr.f32.gmra.mrb[14].mxu1 %v260_v1 }
 0x14e   : > { %v359_v3 = vpop.f32.mrb[0].mxu0  ;;  %v407_v4 = vpop.f32.mrb[0].mxu1 }
 0x14f   : > { %v361_v5 = vpop.f32.mrb[1].mxu0  ;;  %v409_v6 = vpop.f32.mrb[1].mxu1 }
 0x150   : > { %v541_v7 = vadd.f32 %v1327_v2, %v361_v5  ;;  %v549_v8 = vadd.f32 %v1327_v2, %v409_v6 }
 0x152   : > { %557 = vst [vmem:[%s1334_s28] sm:$0xff] %v541_v7  ;;  %565 = vst [vmem:[%s1334_s28 + $0x40] sm:$0xff] %v549_v8  ;;  %v365_v0 = vpop.f32.mrb[2].mxu0  ;;  %v413_v9 = vpop.f32.mrb[2].mxu1 }
 0x153   : > { %v782_v10 = vpack.c.bf16 %v365_v0, %v359_v3  ;;  %v802_v11 = vpack.c.bf16 %v413_v9, %v407_v4  ;;  %v367_v12 = vpop.f32.mrb[3].mxu0  ;;  %v415_v13 = vpop.f32.mrb[3].mxu1 }
 0x154   : > { %v542_v14 = vadd.f32 %v1327_v2, %v367_v12  ;;  %v550_v15 = vadd.f32 %v1327_v2, %v415_v13 }
 0x155   : > { %783 = vst [vmem:[%s1340_s29] sm:$0xff] %v782_v10   ;;  %822 = vst [vmem:[%s1340_s29 + $0x20] sm:$0xff] %v802_v11  }
 0x156   : > { %558 = vst [vmem:[%s1334_s28 + $0x8] sm:$0xff] %v542_v14  ;;  %566 = vst [vmem:[%s1334_s28 + $0x48] sm:$0xff] %v550_v15  ;;  %v371_v16 = vpop.f32.mrb[4].mxu0  ;;  %v419_v17 = vpop.f32.mrb[4].mxu1 }
 0x157   : > { %v373_v18 = vpop.f32.mrb[5].mxu0  ;;  %v421_v19 = vpop.f32.mrb[5].mxu1 }
 0x158   : > { %v543_v20 = vadd.f32 %v1327_v2, %v373_v18  ;;  %v551_v21 = vadd.f32 %v1327_v2, %v421_v19 }
 0x15a   : > { %559 = vst [vmem:[%s1334_s28 + $0x10] sm:$0xff] %v543_v20  ;;  %567 = vst [vmem:[%s1334_s28 + $0x50] sm:$0xff] %v551_v21  ;;  %v377_v22 = vpop.f32.mrb[6].mxu0  ;;  %v425_v23 = vpop.f32.mrb[6].mxu1 }
 0x15b   : > { %v787_v24 = vpack.c.bf16 %v377_v22, %v371_v16  ;;  %v807_v25 = vpack.c.bf16 %v425_v23, %v419_v17  ;;  %v379_v26 = vpop.f32.mrb[7].mxu0  ;;  %v427_v27 = vpop.f32.mrb[7].mxu1 }
 0x15c   : > { %v544_v28 = vadd.f32 %v1327_v2, %v379_v26  ;;  %v552_v29 = vadd.f32 %v1327_v2, %v427_v27 }
 0x15d   : > { %819 = vst [vmem:[%s1340_s29 + $0x8] sm:$0xff] %v787_v24   ;;  %823 = vst [vmem:[%s1340_s29 + $0x28] sm:$0xff] %v807_v25  }
 0x15e   : > { %560 = vst [vmem:[%s1334_s28 + $0x18] sm:$0xff] %v544_v28  ;;  %568 = vst [vmem:[%s1334_s28 + $0x58] sm:$0xff] %v552_v29  ;;  %v383_v30 = vpop.f32.mrb[8].mxu0  ;;  %v431_v31 = vpop.f32.mrb[8].mxu1 }
 0x15f   : > { %v385_v32 = vpop.f32.mrb[9].mxu0  ;;  %v433_v33 = vpop.f32.mrb[9].mxu1 }
 0x160   : > { %v545_v34 = vadd.f32 %v1327_v2, %v385_v32  ;;  %v553_v35 = vadd.f32 %v1327_v2, %v433_v33 }
 0x162   : > { %561 = vst [vmem:[%s1334_s28 + $0x20] sm:$0xff] %v545_v34  ;;  %569 = vst [vmem:[%s1334_s28 + $0x60] sm:$0xff] %v553_v35  ;;  %v389_v36 = vpop.f32.mrb[10].mxu0  ;;  %v437_v37 = vpop.f32.mrb[10].mxu1 }
 0x163   : > { %v792_v38 = vpack.c.bf16 %v389_v36, %v383_v30  ;;  %v812_v39 = vpack.c.bf16 %v437_v37, %v431_v31  ;;  %v391_v40 = vpop.f32.mrb[11].mxu0  ;;  %v439_v41 = vpop.f32.mrb[11].mxu1 }
 0x164   : > { %v546_v42 = vadd.f32 %v1327_v2, %v391_v40  ;;  %v554_v43 = vadd.f32 %v1327_v2, %v439_v41 }
 0x165   : > { %820 = vst [vmem:[%s1340_s29 + $0x10] sm:$0xff] %v792_v38   ;;  %824 = vst [vmem:[%s1340_s29 + $0x30] sm:$0xff] %v812_v39  }
 0x166   : > { %562 = vst [vmem:[%s1334_s28 + $0x28] sm:$0xff] %v546_v42  ;;  %570 = vst [vmem:[%s1334_s28 + $0x68] sm:$0xff] %v554_v43  ;;  %v395_v44 = vpop.f32.mrb[12].mxu0  ;;  %v443_v45 = vpop.f32.mrb[12].mxu1 }
 0x167   : > { %v397_v46 = vpop.f32.mrb[13].mxu0  ;;  %v445_v47 = vpop.f32.mrb[13].mxu1 }
 0x168   : > { %v547_v48 = vadd.f32 %v1327_v2, %v397_v46  ;;  %v555_v49 = vadd.f32 %v1327_v2, %v445_v47 }
 0x16a   : > { %563 = vst [vmem:[%s1334_s28 + $0x30] sm:$0xff] %v547_v48  ;;  %571 = vst [vmem:[%s1334_s28 + $0x70] sm:$0xff] %v555_v49  ;;  %v401_v50 = vpop.f32.mrb[14].mxu0  ;;  %v449_v51 = vpop.f32.mrb[14].mxu1 }
 0x16b   : > { %v797_v52 = vpack.c.bf16 %v401_v50, %v395_v44  ;;  %v817_v53 = vpack.c.bf16 %v449_v51, %v443_v45  ;;  %v403_v54 = vpop.f32.mrb[15].mxu0  ;;  %v451_v55 = vpop.f32.mrb[15].mxu1 }
 0x16c   : > { %v548_v56 = vadd.f32 %v1327_v2, %v403_v54  ;;  %v556_v57 = vadd.f32 %v1327_v2, %v451_v55 }
 0x16d   : > { %821 = vst [vmem:[%s1340_s29 + $0x18] sm:$0xff] %v797_v52   ;;  %825 = vst [vmem:[%s1340_s29 + $0x38] sm:$0xff] %v817_v53  }
 0x16e   : > { %564 = vst [vmem:[%s1334_s28 + $0x38] sm:$0xff] %v548_v56  ;;  %572 = vst [vmem:[%s1334_s28 + $0x78] sm:$0xff] %v556_v57 }
 0x16f   : > { %1016 = shalt.err (!%p1013_p7)
}
 0x170   : > { %s1017_s28 = scalar_lea.hbm %s1376_s8, 1024  ;;  %s1021_s5 = scalar_lea.hbm %s1462_s3, 4096 }
 0x171   : > { %p1018_p9 = scmp.ne.s32.totalorder %s1376_s8, %s1017_s28  ;;  %p1022_p5 = scmp.lt.u32.totalorder %s1376_s8, %s1462_s3 }
 0x172   : > { %p1023_p10 = scmp.lt.u32.totalorder %s1021_s5, %s1017_s28  ;;  %p1025_p1 = scmp.lt.u32.totalorder %s1017_s28, %s1376_s8 }
 0x173   : > { %p1019_p11 = pnand %p1018_p9, %p1228_p12 }
 0x174   : > { %p1024_p2 = por %p1023_p10, %p1022_p5 }
 0x175   : > { %p1020_p0 = pneg %p1019_p11 }
 0x176   : > { %p1026_p4 = por %p1025_p1, %p1024_p2 }
 0x178   : > { %p1027_p6 = pnand %p1026_p4, %p1020_p0 }
 0x17a   : > { %1030 = shalt.err (!%p1027_p6)
}
 0x17b   : > { %s1115_s19 = smov 64   ;;  %s1116_s11 = smov 4  }
 0x17c   : > { %880 = dma.vmem_to_hbm [thread:$0]  (%p1228_p12), %s1368_s10, 1024, %s1376_s8, %s574_s14, %s1115_s19, %s1115_s19, %s1116_s11  }
 0x17d   : > { %s579_s20 = scalar_lea.sflag [#allocation9], %s1276_s12  ;;  %s1031_s21 = scalar_lea.vmem %s1388_s25, 2048 }
 0x17e   : > { %p1032_p8 = scmp.ne.s32.totalorder %s1388_s25, %s1031_s21  ;;  %s1117_s23 = smov [#allocation8]  }
 0x17f   : > { %s1035_s9 = sshll.u32 %s1117_s23, 4  ;;  %s1036_s9 = int_to_ptr.vmem [resolvable:$false] %s1035_s9 }
 0x180   : > { %p1033_p13 = pnand %p1032_p8, %p1228_p12  ;;  %s1037_s28 = scalar_lea.vmem %s1036_s9, 4096 }
 0x181   : > { %p1038_p7 = scmp.lt.s32.totalorder %s1388_s25, %s1036_s9  ;;  %p1039_p9 = scmp.lt.s32.totalorder %s1037_s28, %s1031_s21 }
 0x182   : > { %p1034_p3 = pneg %p1033_p13 }
 0x183   : > { %p1040_p11 = por %p1039_p9, %p1038_p7 }
 0x185   : > { %p1041_p0 = pnand %p1040_p11, %p1034_p3 }
 0x187   : > { %1044 = shalt.err (!%p1041_p0)
}
 0x188   : > { %s1045_s10 = scalar_lea.hbm %s1384_s13, 2048  ;;  %s1049_s29 = scalar_lea.hbm %s1463_s4, 8192 }
 0x189   : > { %p1046_p5 = scmp.ne.s32.totalorder %s1384_s13, %s1045_s10  ;;  %p1050_p1 = scmp.lt.u32.totalorder %s1384_s13, %s1463_s4 }
 0x18a   : > { %p1051_p4 = scmp.lt.u32.totalorder %s1049_s29, %s1045_s10  ;;  %p1053_p8 = scmp.lt.u32.totalorder %s1045_s10, %s1384_s13 }
 0x18b   : > { %p1047_p10 = pnand %p1046_p5, %p1228_p12 }
 0x18c   : > { %p1052_p6 = por %p1051_p4, %p1050_p1 }
 0x18d   : > { %p1048_p2 = pneg %p1047_p10 }
 0x18e   : > { %p1054_p13 = por %p1053_p8, %p1052_p6 }
 0x190   : > { %p1055_p3 = pnand %p1054_p13, %p1048_p2 }
 0x192   : > { %1058 = shalt.err (!%p1055_p3)
}
 0x193   : > { %s1118_s7 = smov 128   ;;  %s1119_s26 = smov 8  }
 0x194   : > { %881 = dma.vmem_to_hbm [thread:$0]  (%p1228_p12), %s1388_s25, 2048, %s1384_s13, %s579_s20, %s1118_s7, %s1118_s7, %s1119_s26  }
 0x195 PF: > { %p902_p7 = scmp.ge.s32.totalorder %s1105_s18, 2  ;;  %s623_s19 = sand.u32 1, %s1093_s15  }
 0x196   : > { %p1478_p9 = scmp.ne.s32.totalorder %s1468_s22, 0  ;;  %s624_s11 = scalar_lea.sflag [#allocation4], %s623_s19 }
 0x198   : > { %p893_p11 = pnand %p902_p7, %p1478_p9 }
 0x19a   : > { %1084 = dma.done.wait (!%p893_p11), %s624_s11, 1024  }
 0x19b   : > { %1086 = vsyncadd (!%p893_p11), %s624_s11, 4294966272  ;;  %s633_s21 = scalar_lea.sflag [#allocation9], %s623_s19 }
 0x19c   : > { %1088 = dma.done.wait (!%p893_p11), %s633_s21, 2048  }
 0x19d   : > { %1090 = vsyncadd (!%p893_p11), %s633_s21, 4294965248  ;;  %p22_p12 = scmp.ge.s32.totalorder %s1198_s27, 6   ;;  %s1479_s15 = smov %s1097_s16 }
 0x19e   : > { %s1480_s16 = smov %s1101_s17  ;;  %s1481_s17 = smov %s1224_s24 }
 0x19f   : > { %s1482_s18 = smov %s1198_s27  ;;  %24 = sbr.rel (!%p22_p12) target bundleno = 8 (0x8), region = 98 }
 0x1a6   :  { %638 = vsyncpa [#allocation3], 1 }
 0x1a7   :  { %640 = vsyncpa [#allocation3 + $0x1], 1 }
 0x1a8   :  { %641 = vsyncpa [#allocation6], 1 }
 0x1a9   :  { %642 = vsyncpa [#allocation4], 1 }
 0x1aa   :  { %644 = vsyncpa [#allocation4 + $0x1], 1 }
 0x1ab   :  { %645 = vsyncpa [#allocation9], 1 }
 0x1ac   :  { %647 = vsyncpa [#allocation9 + $0x1], 1 }

</bundles_post_ra>
